<compile_context>
chip_gen: v6e
topology: v6e:2x2x1
jax: 0.10.0
libtpu: 0.0.40
codegen_flags: <defaults>
</compile_context>

<pallas_src>
import jax
import jax.numpy as jnp
import numpy as np
from jax.experimental import pallas as pl
from jax.experimental.pallas import tpu as pltpu


def _round_up(v: int, m: int) -> int:
    return ((v + m - 1) // m) * m


def _vmem_capacity_bytes() -> int:
    try:
        return int(pltpu.get_tpu_info().vmem_capacity_bytes)
    except Exception:
        return 64 * 1024 * 1024  # conservative (v7x-class) fallback


def _pick_tile(N: int, S: int, C_in: int, C_out_p: int):
    """VMEM-driven choice of output rows (points) handled per grid step."""
    cap = _vmem_capacity_bytes()
    if cap <= 80 * 1024 * 1024:            # v7x-class: 64 MiB VMEM per TensorCore
        budget, vmem_limit = 28 << 20, 48 << 20
    else:                                   # v5e / v6e: 128 MiB VMEM
        budget, vmem_limit = 56 << 20, 96 << 20

    cin_lane = _round_up(C_in, 128)         # x lane-pads C_in in VMEM (small C_in blow-up)
    per_pt = (2 * S * cin_lane * 2          # bf16 x tile, double-buffered
              + 2 * C_out_p * 4             # f32 output tile, double-buffered
              + 2 * C_out_p * 4)            # f32 accumulator + per-step matmul temp
    fixed = (2 * _round_up(C_in, 8) * C_out_p * 2   # resident bf16 weight (x2 buffers)
             + 2 * 8 * C_out_p * 4)                 # bias
    avail = max(budget - fixed, 8 * per_pt)

    if N <= 8:
        return N, vmem_limit                # single full-extent block (allowed: full dim)

    pts = max(8, min((avail // per_pt) // 8 * 8, (N // 8) * 8))
    if pts >= N:
        # v7x has 2 TensorCores; give the "parallel" grid axis at least 2 steps.
        pts = _round_up(pl.cdiv(N, 2), 8)
    return pts, vmem_limit


def _gloavg_kernel(x_ref, w_ref, b_ref, o_ref):
    # x_ref: (S, pts, C_in) bf16   w_ref: (C_in, C_out_p) bf16
    # b_ref: (1, C_out_p) f32      o_ref: (pts, C_out_p) f32
    S = x_ref.shape[0]
    w = w_ref[...]

    # Running max over nsample of per-slice channel matmuls (MXU, f32 accumulate).
    acc0 = jnp.dot(x_ref[0], w, preferred_element_type=jnp.float32)

    def body(s, acc):
        y = jnp.dot(x_ref[s], w, preferred_element_type=jnp.float32)
        return jnp.maximum(acc, y)

    acc = jax.lax.fori_loop(1, S, body, acc0, unroll=True)

    # Bias + ReLU after the pool (exact: bias constant over pooled axis, ReLU monotone).
    # Lane-dense f32 store (C_out_p is a multiple of 128).
    o_ref[...] = jnp.maximum(acc + b_ref[...], 0.0).astype(o_ref.dtype)


def _glo_avg_conv_impl(x_tuple, weight, bias):
    """x_tuple: tuple/list whose first element is a (B, C_in, P, S) NCHW tensor.

    weight: (C_out, C_in) 1x1-conv weight, bias: (C_out,). Returns (B, C_out, P) f32.
    """
    x = x_tuple[0]
    B, C_in, P, S = x.shape
    C_out = weight.shape[0]
    N = B * P
    C_out_p = _round_up(C_out, 128)

    pts, vmem_limit = _pick_tile(N, S, C_in, C_out_p)
    grid = (pl.cdiv(N, pts),)

    # Layout plumbing (fused into the pallas_call input read: jit + allow_input_fusion):
    #   x: (B, C_in, P, S) -> (S, B*P, C_in) bf16; weight -> (C_in, C_out_p) bf16.
    x3 = jnp.transpose(x, (3, 0, 2, 1)).reshape(S, N, C_in).astype(jnp.bfloat16)
    w_t = jnp.pad(jnp.transpose(weight, (1, 0)),
                  ((0, 0), (0, C_out_p - C_out))).astype(jnp.bfloat16)
    b2 = jnp.pad(bias.astype(jnp.float32), (0, C_out_p - C_out)).reshape(1, C_out_p)

    out2 = pl.pallas_call(
        _gloavg_kernel,
        out_shape=jax.ShapeDtypeStruct((N, C_out_p), jnp.float32),
        grid_spec=pltpu.PrefetchScalarGridSpec(
            num_scalar_prefetch=0,
            grid=grid,
            in_specs=[
                pl.BlockSpec((S, pts, C_in), lambda i: (0, i, 0)),
                pl.BlockSpec((C_in, C_out_p), lambda i: (0, 0)),   # resident weight
                pl.BlockSpec((1, C_out_p), lambda i: (0, 0)),      # resident bias
            ],
            out_specs=pl.BlockSpec((pts, C_out_p), lambda i: (i, 0)),
        ),
        compiler_params=pltpu.CompilerParams(
            dimension_semantics=("parallel",),
            vmem_limit_bytes=vmem_limit,
            allow_input_fusion=[True, False, False],
        ),
    )(x3, w_t, b2)

    # (N, C_out_p) -> drop lane padding -> (B, P, C_out) -> (B, C_out, P)
    return jnp.transpose(out2[:, :C_out].reshape(B, P, C_out), (0, 2, 1))


glo_avg_conv = jax.jit(_glo_avg_conv_impl)


def _reference(x, weight, bias):
    # plain-JAX f32 reference: 1x1 conv + bias + ReLU, then max over nsample
    y = jnp.einsum("oc,bcps->bops", weight, x) + bias[None, :, None, None]
    y = jnp.maximum(y, 0.0)
    return jnp.max(y, axis=-1)


if __name__ == "__main__":
    key = jax.random.PRNGKey(0)
    k_x, k_w, k_b = jax.random.split(key, 3)

    B, C_in, C_out, P, S = 2, 4, 8, 20, 16   # (B, C_in, npoint, nsample)

    x = jax.random.normal(k_x, (B, C_in, P, S), dtype=jnp.float32)
    # deterministic synthetic mlp params (Conv2d 1x1 weight/bias)
    weight = jax.random.normal(k_w, (C_out, C_in), dtype=jnp.float32) * 0.1
    bias = jax.random.normal(k_b, (C_out,), dtype=jnp.float32) * 0.1

    out = glo_avg_conv((x,), weight, bias)
    out = jax.block_until_ready(out)
    assert out.shape == (B, C_out, P)

    ref = _reference(x, weight, bias)
    # bf16 inputs / f32 accumulation -> loosened tolerance vs. the f32 reference.
    np.testing.assert_allclose(np.asarray(out), np.asarray(ref), rtol=2e-2, atol=2e-2)
    print("KERNEL_OK")
</pallas_src>

<mosaic_0001>
module attributes {stable_mosaic.version = 11 : i64} {
  func.func @_gloavg_kernel(%arg0: i32, %arg1: memref<16x24x4xbf16, #tpu.memory_space<vmem>>, %arg2: memref<4x128xbf16, #tpu.memory_space<vmem>>, %arg3: memref<1x128xf32, #tpu.memory_space<vmem>>, %arg4: memref<24x128xf32, #tpu.memory_space<vmem>>) attributes {dimension_semantics = [#tpu.dimension_semantics<parallel>], iteration_bounds = array<i64: 2>, scalar_prefetch = 0 : i64, scratch_operands = 0 : i64, tpu.core_type = #tpu.core_type<tc>, window_params = [{transform_indices = @transform_0, window_bounds = array<i64: 16, 24, 4>}, {pipeline_mode = #tpu.pipeline_mode<synchronous>, transform_indices = @transform_1, window_bounds = array<i64: 4, 128>}, {pipeline_mode = #tpu.pipeline_mode<synchronous>, transform_indices = @transform_2, window_bounds = array<i64: 1, 128>}, {transform_indices = @transform_3, window_bounds = array<i64: 24, 128>}]} {
    %c0 = arith.constant 0 : index
    %c0_0 = arith.constant 0 : index
    %0 = vector.load %arg2[%c0, %c0_0] : memref<4x128xbf16, #tpu.memory_space<vmem>>, vector<4x128xbf16>
    %c0_1 = arith.constant 0 : index
    %c0_2 = arith.constant 0 : index
    %c0_3 = arith.constant 0 : index
    %1 = vector.load %arg1[%c0_1, %c0_2, %c0_3] : memref<16x24x4xbf16, #tpu.memory_space<vmem>>, vector<1x24x4xbf16>
    %2 = vector.shape_cast %1 : vector<1x24x4xbf16> to vector<24x4xbf16>
    %cst = arith.constant dense<0.000000e+00> : vector<24x128xf32>
    %3 = tpu.matmul %2, %0, %cst {dimension_numbers = #tpu.dot_dimension_numbers<[1], [0], [0], [1], [0, 0, 1, 1], [], []>} : vector<24x4xbf16>, vector<4x128xbf16>, vector<24x128xf32> -> vector<24x128xf32>
    %c1_i32 = arith.constant 1 : i32
    %4 = arith.index_cast %c1_i32 : i32 to index
    %c0_4 = arith.constant 0 : index
    %c0_5 = arith.constant 0 : index
    %5 = vector.load %arg1[%4, %c0_4, %c0_5] : memref<16x24x4xbf16, #tpu.memory_space<vmem>>, vector<1x24x4xbf16>
    %6 = vector.shape_cast %5 : vector<1x24x4xbf16> to vector<24x4xbf16>
    %cst_6 = arith.constant dense<0.000000e+00> : vector<24x128xf32>
    %7 = tpu.matmul %6, %0, %cst_6 {dimension_numbers = #tpu.dot_dimension_numbers<[1], [0], [0], [1], [0, 0, 1, 1], [], []>} : vector<24x4xbf16>, vector<4x128xbf16>, vector<24x128xf32> -> vector<24x128xf32>
    %8 = arith.maximumf %3, %7 : vector<24x128xf32>
    %c2_i32 = arith.constant 2 : i32
    %9 = arith.index_cast %c2_i32 : i32 to index
    %c0_7 = arith.constant 0 : index
    %c0_8 = arith.constant 0 : index
    %10 = vector.load %arg1[%9, %c0_7, %c0_8] : memref<16x24x4xbf16, #tpu.memory_space<vmem>>, vector<1x24x4xbf16>
    %11 = vector.shape_cast %10 : vector<1x24x4xbf16> to vector<24x4xbf16>
    %cst_9 = arith.constant dense<0.000000e+00> : vector<24x128xf32>
    %12 = tpu.matmul %11, %0, %cst_9 {dimension_numbers = #tpu.dot_dimension_numbers<[1], [0], [0], [1], [0, 0, 1, 1], [], []>} : vector<24x4xbf16>, vector<4x128xbf16>, vector<24x128xf32> -> vector<24x128xf32>
    %13 = arith.maximumf %8, %12 : vector<24x128xf32>
    %c3_i32 = arith.constant 3 : i32
    %14 = arith.index_cast %c3_i32 : i32 to index
    %c0_10 = arith.constant 0 : index
    %c0_11 = arith.constant 0 : index
    %15 = vector.load %arg1[%14, %c0_10, %c0_11] : memref<16x24x4xbf16, #tpu.memory_space<vmem>>, vector<1x24x4xbf16>
    %16 = vector.shape_cast %15 : vector<1x24x4xbf16> to vector<24x4xbf16>
    %cst_12 = arith.constant dense<0.000000e+00> : vector<24x128xf32>
    %17 = tpu.matmul %16, %0, %cst_12 {dimension_numbers = #tpu.dot_dimension_numbers<[1], [0], [0], [1], [0, 0, 1, 1], [], []>} : vector<24x4xbf16>, vector<4x128xbf16>, vector<24x128xf32> -> vector<24x128xf32>
    %18 = arith.maximumf %13, %17 : vector<24x128xf32>
    %c4_i32 = arith.constant 4 : i32
    %19 = arith.index_cast %c4_i32 : i32 to index
    %c0_13 = arith.constant 0 : index
    %c0_14 = arith.constant 0 : index
    %20 = vector.load %arg1[%19, %c0_13, %c0_14] : memref<16x24x4xbf16, #tpu.memory_space<vmem>>, vector<1x24x4xbf16>
    %21 = vector.shape_cast %20 : vector<1x24x4xbf16> to vector<24x4xbf16>
    %cst_15 = arith.constant dense<0.000000e+00> : vector<24x128xf32>
    %22 = tpu.matmul %21, %0, %cst_15 {dimension_numbers = #tpu.dot_dimension_numbers<[1], [0], [0], [1], [0, 0, 1, 1], [], []>} : vector<24x4xbf16>, vector<4x128xbf16>, vector<24x128xf32> -> vector<24x128xf32>
    %23 = arith.maximumf %18, %22 : vector<24x128xf32>
    %c5_i32 = arith.constant 5 : i32
    %24 = arith.index_cast %c5_i32 : i32 to index
    %c0_16 = arith.constant 0 : index
    %c0_17 = arith.constant 0 : index
    %25 = vector.load %arg1[%24, %c0_16, %c0_17] : memref<16x24x4xbf16, #tpu.memory_space<vmem>>, vector<1x24x4xbf16>
    %26 = vector.shape_cast %25 : vector<1x24x4xbf16> to vector<24x4xbf16>
    %cst_18 = arith.constant dense<0.000000e+00> : vector<24x128xf32>
    %27 = tpu.matmul %26, %0, %cst_18 {dimension_numbers = #tpu.dot_dimension_numbers<[1], [0], [0], [1], [0, 0, 1, 1], [], []>} : vector<24x4xbf16>, vector<4x128xbf16>, vector<24x128xf32> -> vector<24x128xf32>
    %28 = arith.maximumf %23, %27 : vector<24x128xf32>
    %c6_i32 = arith.constant 6 : i32
    %29 = arith.index_cast %c6_i32 : i32 to index
    %c0_19 = arith.constant 0 : index
    %c0_20 = arith.constant 0 : index
    %30 = vector.load %arg1[%29, %c0_19, %c0_20] : memref<16x24x4xbf16, #tpu.memory_space<vmem>>, vector<1x24x4xbf16>
    %31 = vector.shape_cast %30 : vector<1x24x4xbf16> to vector<24x4xbf16>
    %cst_21 = arith.constant dense<0.000000e+00> : vector<24x128xf32>
    %32 = tpu.matmul %31, %0, %cst_21 {dimension_numbers = #tpu.dot_dimension_numbers<[1], [0], [0], [1], [0, 0, 1, 1], [], []>} : vector<24x4xbf16>, vector<4x128xbf16>, vector<24x128xf32> -> vector<24x128xf32>
    %33 = arith.maximumf %28, %32 : vector<24x128xf32>
    %c7_i32 = arith.constant 7 : i32
    %34 = arith.index_cast %c7_i32 : i32 to index
    %c0_22 = arith.constant 0 : index
    %c0_23 = arith.constant 0 : index
    %35 = vector.load %arg1[%34, %c0_22, %c0_23] : memref<16x24x4xbf16, #tpu.memory_space<vmem>>, vector<1x24x4xbf16>
    %36 = vector.shape_cast %35 : vector<1x24x4xbf16> to vector<24x4xbf16>
    %cst_24 = arith.constant dense<0.000000e+00> : vector<24x128xf32>
    %37 = tpu.matmul %36, %0, %cst_24 {dimension_numbers = #tpu.dot_dimension_numbers<[1], [0], [0], [1], [0, 0, 1, 1], [], []>} : vector<24x4xbf16>, vector<4x128xbf16>, vector<24x128xf32> -> vector<24x128xf32>
    %38 = arith.maximumf %33, %37 : vector<24x128xf32>
    %c8_i32 = arith.constant 8 : i32
    %39 = arith.index_cast %c8_i32 : i32 to index
    %c0_25 = arith.constant 0 : index
    %c0_26 = arith.constant 0 : index
    %40 = vector.load %arg1[%39, %c0_25, %c0_26] : memref<16x24x4xbf16, #tpu.memory_space<vmem>>, vector<1x24x4xbf16>
    %41 = vector.shape_cast %40 : vector<1x24x4xbf16> to vector<24x4xbf16>
    %cst_27 = arith.constant dense<0.000000e+00> : vector<24x128xf32>
    %42 = tpu.matmul %41, %0, %cst_27 {dimension_numbers = #tpu.dot_dimension_numbers<[1], [0], [0], [1], [0, 0, 1, 1], [], []>} : vector<24x4xbf16>, vector<4x128xbf16>, vector<24x128xf32> -> vector<24x128xf32>
    %43 = arith.maximumf %38, %42 : vector<24x128xf32>
    %c9_i32 = arith.constant 9 : i32
    %44 = arith.index_cast %c9_i32 : i32 to index
    %c0_28 = arith.constant 0 : index
    %c0_29 = arith.constant 0 : index
    %45 = vector.load %arg1[%44, %c0_28, %c0_29] : memref<16x24x4xbf16, #tpu.memory_space<vmem>>, vector<1x24x4xbf16>
    %46 = vector.shape_cast %45 : vector<1x24x4xbf16> to vector<24x4xbf16>
    %cst_30 = arith.constant dense<0.000000e+00> : vector<24x128xf32>
    %47 = tpu.matmul %46, %0, %cst_30 {dimension_numbers = #tpu.dot_dimension_numbers<[1], [0], [0], [1], [0, 0, 1, 1], [], []>} : vector<24x4xbf16>, vector<4x128xbf16>, vector<24x128xf32> -> vector<24x128xf32>
    %48 = arith.maximumf %43, %47 : vector<24x128xf32>
    %c10_i32 = arith.constant 10 : i32
    %49 = arith.index_cast %c10_i32 : i32 to index
    %c0_31 = arith.constant 0 : index
    %c0_32 = arith.constant 0 : index
    %50 = vector.load %arg1[%49, %c0_31, %c0_32] : memref<16x24x4xbf16, #tpu.memory_space<vmem>>, vector<1x24x4xbf16>
    %51 = vector.shape_cast %50 : vector<1x24x4xbf16> to vector<24x4xbf16>
    %cst_33 = arith.constant dense<0.000000e+00> : vector<24x128xf32>
    %52 = tpu.matmul %51, %0, %cst_33 {dimension_numbers = #tpu.dot_dimension_numbers<[1], [0], [0], [1], [0, 0, 1, 1], [], []>} : vector<24x4xbf16>, vector<4x128xbf16>, vector<24x128xf32> -> vector<24x128xf32>
    %53 = arith.maximumf %48, %52 : vector<24x128xf32>
    %c11_i32 = arith.constant 11 : i32
    %54 = arith.index_cast %c11_i32 : i32 to index
    %c0_34 = arith.constant 0 : index
    %c0_35 = arith.constant 0 : index
    %55 = vector.load %arg1[%54, %c0_34, %c0_35] : memref<16x24x4xbf16, #tpu.memory_space<vmem>>, vector<1x24x4xbf16>
    %56 = vector.shape_cast %55 : vector<1x24x4xbf16> to vector<24x4xbf16>
    %cst_36 = arith.constant dense<0.000000e+00> : vector<24x128xf32>
    %57 = tpu.matmul %56, %0, %cst_36 {dimension_numbers = #tpu.dot_dimension_numbers<[1], [0], [0], [1], [0, 0, 1, 1], [], []>} : vector<24x4xbf16>, vector<4x128xbf16>, vector<24x128xf32> -> vector<24x128xf32>
    %58 = arith.maximumf %53, %57 : vector<24x128xf32>
    %c12_i32 = arith.constant 12 : i32
    %59 = arith.index_cast %c12_i32 : i32 to index
    %c0_37 = arith.constant 0 : index
    %c0_38 = arith.constant 0 : index
    %60 = vector.load %arg1[%59, %c0_37, %c0_38] : memref<16x24x4xbf16, #tpu.memory_space<vmem>>, vector<1x24x4xbf16>
    %61 = vector.shape_cast %60 : vector<1x24x4xbf16> to vector<24x4xbf16>
    %cst_39 = arith.constant dense<0.000000e+00> : vector<24x128xf32>
    %62 = tpu.matmul %61, %0, %cst_39 {dimension_numbers = #tpu.dot_dimension_numbers<[1], [0], [0], [1], [0, 0, 1, 1], [], []>} : vector<24x4xbf16>, vector<4x128xbf16>, vector<24x128xf32> -> vector<24x128xf32>
    %63 = arith.maximumf %58, %62 : vector<24x128xf32>
    %c13_i32 = arith.constant 13 : i32
    %64 = arith.index_cast %c13_i32 : i32 to index
    %c0_40 = arith.constant 0 : index
    %c0_41 = arith.constant 0 : index
    %65 = vector.load %arg1[%64, %c0_40, %c0_41] : memref<16x24x4xbf16, #tpu.memory_space<vmem>>, vector<1x24x4xbf16>
    %66 = vector.shape_cast %65 : vector<1x24x4xbf16> to vector<24x4xbf16>
    %cst_42 = arith.constant dense<0.000000e+00> : vector<24x128xf32>
    %67 = tpu.matmul %66, %0, %cst_42 {dimension_numbers = #tpu.dot_dimension_numbers<[1], [0], [0], [1], [0, 0, 1, 1], [], []>} : vector<24x4xbf16>, vector<4x128xbf16>, vector<24x128xf32> -> vector<24x128xf32>
    %68 = arith.maximumf %63, %67 : vector<24x128xf32>
    %c14_i32 = arith.constant 14 : i32
    %69 = arith.index_cast %c14_i32 : i32 to index
    %c0_43 = arith.constant 0 : index
    %c0_44 = arith.constant 0 : index
    %70 = vector.load %arg1[%69, %c0_43, %c0_44] : memref<16x24x4xbf16, #tpu.memory_space<vmem>>, vector<1x24x4xbf16>
    %71 = vector.shape_cast %70 : vector<1x24x4xbf16> to vector<24x4xbf16>
    %cst_45 = arith.constant dense<0.000000e+00> : vector<24x128xf32>
    %72 = tpu.matmul %71, %0, %cst_45 {dimension_numbers = #tpu.dot_dimension_numbers<[1], [0], [0], [1], [0, 0, 1, 1], [], []>} : vector<24x4xbf16>, vector<4x128xbf16>, vector<24x128xf32> -> vector<24x128xf32>
    %73 = arith.maximumf %68, %72 : vector<24x128xf32>
    %c15_i32 = arith.constant 15 : i32
    %74 = arith.index_cast %c15_i32 : i32 to index
    %c0_46 = arith.constant 0 : index
    %c0_47 = arith.constant 0 : index
    %75 = vector.load %arg1[%74, %c0_46, %c0_47] : memref<16x24x4xbf16, #tpu.memory_space<vmem>>, vector<1x24x4xbf16>
    %76 = vector.shape_cast %75 : vector<1x24x4xbf16> to vector<24x4xbf16>
    %cst_48 = arith.constant dense<0.000000e+00> : vector<24x128xf32>
    %77 = tpu.matmul %76, %0, %cst_48 {dimension_numbers = #tpu.dot_dimension_numbers<[1], [0], [0], [1], [0, 0, 1, 1], [], []>} : vector<24x4xbf16>, vector<4x128xbf16>, vector<24x128xf32> -> vector<24x128xf32>
    %78 = arith.maximumf %73, %77 : vector<24x128xf32>
    %c15_i32_49 = arith.constant 15 : i32
    %c0_50 = arith.constant 0 : index
    %c0_51 = arith.constant 0 : index
    %79 = vector.load %arg3[%c0_50, %c0_51] : memref<1x128xf32, #tpu.memory_space<vmem>>, vector<1x128xf32>
    %80 = vector.broadcast %79 : vector<1x128xf32> to vector<24x128xf32>
    %81 = arith.addf %78, %80 : vector<24x128xf32>
    %cst_52 = arith.constant 0.000000e+00 : f32
    %82 = vector.broadcast %cst_52 : f32 to vector<24x128xf32>
    %83 = arith.maximumf %81, %82 : vector<24x128xf32>
    %c0_53 = arith.constant 0 : index
    %c0_54 = arith.constant 0 : index
    %84 = vector.load %arg4[%c0_53, %c0_54] : memref<24x128xf32, #tpu.memory_space<vmem>>, vector<24x128xf32>
    tpu.vector_store %arg4[%c0_53, %c0_54], %83 {strides = array<i32>} : memref<24x128xf32, #tpu.memory_space<vmem>>, vector<24x128xf32>,
    return
  }
  func.func @transform_0(%arg0: i32) -> (i32, i32, i32) {
    %c0_i32 = arith.constant 0 : i32
    %c0_i32_0 = arith.constant 0 : i32
    %c0_i32_1 = arith.constant 0 : i32
    return %c0_i32, %arg0, %c0_i32_0 : i32, i32, i32
  }
  func.func @transform_1(%arg0: i32) -> (i32, i32) {
    %c0_i32 = arith.constant 0 : i32
    %c0_i32_0 = arith.constant 0 : i32
    %c0_i32_1 = arith.constant 0 : i32
    return %c0_i32, %c0_i32_0 : i32, i32
  }
  func.func @transform_2(%arg0: i32) -> (i32, i32) {
    %c0_i32 = arith.constant 0 : i32
    %c0_i32_0 = arith.constant 0 : i32
    %c0_i32_1 = arith.constant 0 : i32
    return %c0_i32, %c0_i32_0 : i32, i32
  }
  func.func @transform_3(%arg0: i32) -> (i32, i32) {
    %c0_i32 = arith.constant 0 : i32
    %c0_i32_0 = arith.constant 0 : i32
    return %arg0, %c0_i32 : i32, i32
  }
}

</mosaic_0001>

<bundles_post_ra>
// kernel: _glo_avg_conv_impl.1
= control target key start
LH: loop header
LB: loop body
LE: loop exit
PB: predicated region body
PF: predicated region fallthrough
CT: control target
= control target key end

     0   :  { %s2658_s12 = smov 0   ;;  %s2660_s13 = smov 0   ;;  %s3096_s0 = inlined_call_operand.vmem [shape: bf16[16,40,4], index: 0, kind: input, shape index: {}]   ;;  %s3097_s1 = inlined_call_operand.vmem [shape: bf16[4,128], index: 1, kind: input, shape index: {}]   ;;  %s3098_s2 = inlined_call_operand.vmem [shape: f32[1,128], index: 2, kind: input, shape index: {}]   ;;  %s3099_s3 = inlined_call_operand.vmem [shape: f32[40,128], index: 3, kind: output, shape index: {}]  }
   0x1   :  { %s2662_s14 = smov 0  }
   0x2 LB: > { %s2674_s15 = sadd.s32 4294967295, %s2572_s14   ;;  %s2677_s16 = sadd.s32 1, %s2572_s14   ;;  %s2572_s14 = sphi %s2662_s14, %s3109_s14   ;;  %s2568_s13 = sphi %s2660_s13, %s3108_s13   ;;  %s2564_s12 = sphi %s2658_s12, %s3107_s12  }
   0x3   : > { %s17_s17 = ssub.s32 %s2572_s14, %s2677_s16  ;;  %s20_s18 = sadd.s32 1, %s2568_s13 }
   0x4   : > { %p18_p0 = scmp.eq.s32.totalorder %s17_s17, 0  ;;  %p27_p1 = scmp.ne.s32.totalorder %s2568_s13, %s2564_s12 }
   0x5   : > { %p28_p2 = scmp.eq.s32.totalorder %s2572_s14, 0  ;;  %p99_p3 = scmp.eq.s32.totalorder %s2674_s15, 1 }
   0x6   : > { %s2687_s19 = scalar_select %p18_p0, %s2568_s13, %s20_s18  }
   0x7   : > { %p29_p4 = por %p28_p2, %p27_p1  ;;  %p2689_p5 = por %p99_p3, %p27_p1 }
   0x8   : > { %p1993_p6 = scmp.ge.s32.totalorder %s2572_s14, 2 }
   0xa   : > { %127 = sbr.rel (%p1993_p6) target bundleno = 116 (0x74), region = 24 }
   0xf   : > { %130 = sbr.rel (!%p29_p4) target bundleno = 116 (0x74), region = 28  ;;  %s132_s21 = sand.u32 (%p29_p4), 1, %s2568_s13  }
  0x10   : > { %s135_s22 = smul.u32 (%p29_p4), 3, %s2572_s14 }
  0x11   : > { %s2289_s23 = smul.u32 (%p29_p4), 192, %s132_s21 }
  0x12   : > { %s136_s24 = ssub.s32 (%p29_p4), 5, %s135_s22  ;;  %s2127_s25 = smul.u32 (%p29_p4), 12, %s2572_s14 }
  0x13   : > { %p137_p7 = scmp.lt.s32.totalorder (%p29_p4), %s136_s24, 3  ;;  %s2705_s30 = scalar_lea.vmem (%p29_p4), [#allocation2], %s2289_s23  }
  0x14   : > { %s2700_s28 = scalar_lea.vmem %s3096_s0, %s2127_s25  }
  0x15   : > { %s3111_s24 = smov (!%p137_p7, %s136_s24), 3 }
  0x16   : > { %s1994_s29 = sshll.u32 %s3111_s24, 10 }
  0x17   : > { %p1997_p8 = scmp.eq.s32.totalorder %s1994_s29, 0 }
  0x18   : > { %2446 = sdivrem.u32 (!%p1997_p8), %s3111_s24, 3 }
  0x19   : > { %145 = sbr.rel (%p1997_p8) target bundleno = 116 (0x74), region = 32 }
  0x21   : > { %s2708_s4 = spop.drf %2446 }
  0x22   : > { %p1998_p9 = scmp.le.s32.totalorder %s2708_s4, 0 }
  0x23   : > { %s3101_s5 = smov (!%p1998_p9), %s2705_s30  ;;  %s3102_s6 = smov (!%p1998_p9), %s2700_s28 }
  0x24   : > { %1919 = sbr.rel (%p1998_p9) target bundleno = 81 (0x51), region = 212  ;;  %s2717_s7 = smov (!%p1998_p9), 0  }
  0x25   : > { %s2719_s8 = smov (!%p1998_p9), 0  }
  0x29 LB: >> { %v163_v0 = vld [vmem:[%s2580_s6] sm:$0xf]  ;;  %v165_v1 = vld [vmem:[%s2580_s6 + $0x4] sm:$0xf]  ;;  %v167_v2 = vld [vmem:[%s2580_s6 + $0x8] sm:$0xf]  ;;  %s2588_s8 = sphi %s2719_s8, %s157_s8   ;;  %s2584_s7 = sphi %s2717_s7, %s3103_s7   ;;  %s2580_s6 = sphi %s3102_s6, %s264_s6   ;;  %s2576_s5 = sphi %s3101_s5, %s265_s5  }
  0x2a   : >> { %164 = vst [vmem:[%s2576_s5] sm:$0xf] %v163_v0  ;;  %166 = vst [vmem:[%s2576_s5 + $0x4] sm:$0xf] %v165_v1  ;;  %v169_v3 = vld [vmem:[%s2580_s6 + $0x14] sm:$0xf]  ;;  %s259_s9 = sadd.s32 1, %s2584_s7 }
  0x2b   : >> { %168 = vst [vmem:[%s2576_s5 + $0x8] sm:$0xf] %v167_v2  ;;  %v171_v4 = vld [vmem:[%s2580_s6 + $0x18] sm:$0xf]  ;;  %v173_v5 = vld [vmem:[%s2580_s6 + $0x1c] sm:$0xf]  ;;  %p260_p10 = scmp.ge.s32.totalorder %s259_s9, %s2708_s4 }
  0x2c   : >> { %170 = vst [vmem:[%s2576_s5 + $0xc] sm:$0xf] %v169_v3  ;;  %172 = vst [vmem:[%s2576_s5 + $0x10] sm:$0xf] %v171_v4  ;;  %v175_v6 = vld [vmem:[%s2580_s6 + $0x28] sm:$0xf] }
  0x2d   : >> { %174 = vst [vmem:[%s2576_s5 + $0x14] sm:$0xf] %v173_v5  ;;  %v177_v7 = vld [vmem:[%s2580_s6 + $0x2c] sm:$0xf]  ;;  %v179_v8 = vld [vmem:[%s2580_s6 + $0x30] sm:$0xf] }
  0x2e   : >> { %176 = vst [vmem:[%s2576_s5 + $0x18] sm:$0xf] %v175_v6  ;;  %178 = vst [vmem:[%s2576_s5 + $0x1c] sm:$0xf] %v177_v7  ;;  %v181_v9 = vld [vmem:[%s2580_s6 + $0x3c] sm:$0xf] }
  0x2f   : >> { %180 = vst [vmem:[%s2576_s5 + $0x20] sm:$0xf] %v179_v8  ;;  %v183_v10 = vld [vmem:[%s2580_s6 + $0x40] sm:$0xf]  ;;  %v185_v11 = vld [vmem:[%s2580_s6 + $0x44] sm:$0xf] }
  0x30   : >> { %182 = vst [vmem:[%s2576_s5 + $0x24] sm:$0xf] %v181_v9  ;;  %184 = vst [vmem:[%s2576_s5 + $0x28] sm:$0xf] %v183_v10  ;;  %v187_v12 = vld [vmem:[%s2580_s6 + $0x50] sm:$0xf] }
  0x31   : >> { %186 = vst [vmem:[%s2576_s5 + $0x2c] sm:$0xf] %v185_v11  ;;  %v189_v13 = vld [vmem:[%s2580_s6 + $0x54] sm:$0xf]  ;;  %v191_v14 = vld [vmem:[%s2580_s6 + $0x58] sm:$0xf] }
  0x32   : >> { %188 = vst [vmem:[%s2576_s5 + $0x30] sm:$0xf] %v187_v12  ;;  %190 = vst [vmem:[%s2576_s5 + $0x34] sm:$0xf] %v189_v13  ;;  %v193_v15 = vld [vmem:[%s2580_s6 + $0x64] sm:$0xf] }
  0x33   : >> { %192 = vst [vmem:[%s2576_s5 + $0x38] sm:$0xf] %v191_v14  ;;  %v195_v16 = vld [vmem:[%s2580_s6 + $0x68] sm:$0xf]  ;;  %v197_v17 = vld [vmem:[%s2580_s6 + $0x6c] sm:$0xf] }
  0x34   : >> { %194 = vst [vmem:[%s2576_s5 + $0x3c] sm:$0xf] %v193_v15  ;;  %196 = vst [vmem:[%s2576_s5 + $0x40] sm:$0xf] %v195_v16  ;;  %v199_v18 = vld [vmem:[%s2580_s6 + $0x78] sm:$0xf] }
  0x35   : >> { %198 = vst [vmem:[%s2576_s5 + $0x44] sm:$0xf] %v197_v17  ;;  %v201_v19 = vld [vmem:[%s2580_s6 + $0x7c] sm:$0xf]  ;;  %v203_v20 = vld [vmem:[%s2580_s6 + $0x80] sm:$0xf] }
  0x36   : >> { %200 = vst [vmem:[%s2576_s5 + $0x48] sm:$0xf] %v199_v18  ;;  %202 = vst [vmem:[%s2576_s5 + $0x4c] sm:$0xf] %v201_v19  ;;  %v205_v21 = vld [vmem:[%s2580_s6 + $0x8c] sm:$0xf] }
  0x37   : >> { %204 = vst [vmem:[%s2576_s5 + $0x50] sm:$0xf] %v203_v20  ;;  %v207_v22 = vld [vmem:[%s2580_s6 + $0x90] sm:$0xf]  ;;  %v209_v23 = vld [vmem:[%s2580_s6 + $0x94] sm:$0xf] }
  0x38   : >> { %206 = vst [vmem:[%s2576_s5 + $0x54] sm:$0xf] %v205_v21  ;;  %208 = vst [vmem:[%s2576_s5 + $0x58] sm:$0xf] %v207_v22  ;;  %v211_v24 = vld [vmem:[%s2580_s6 + $0xa0] sm:$0xf] }
  0x39   : >> { %210 = vst [vmem:[%s2576_s5 + $0x5c] sm:$0xf] %v209_v23  ;;  %v213_v25 = vld [vmem:[%s2580_s6 + $0xa4] sm:$0xf]  ;;  %v215_v26 = vld [vmem:[%s2580_s6 + $0xa8] sm:$0xf] }
  0x3a   : >> { %212 = vst [vmem:[%s2576_s5 + $0x60] sm:$0xf] %v211_v24  ;;  %214 = vst [vmem:[%s2576_s5 + $0x64] sm:$0xf] %v213_v25  ;;  %v217_v27 = vld [vmem:[%s2580_s6 + $0xb4] sm:$0xf] }
  0x3b   : >> { %216 = vst [vmem:[%s2576_s5 + $0x68] sm:$0xf] %v215_v26  ;;  %v219_v28 = vld [vmem:[%s2580_s6 + $0xb8] sm:$0xf]  ;;  %v221_v29 = vld [vmem:[%s2580_s6 + $0xbc] sm:$0xf] }
  0x3c   : >> { %218 = vst [vmem:[%s2576_s5 + $0x6c] sm:$0xf] %v217_v27  ;;  %220 = vst [vmem:[%s2576_s5 + $0x70] sm:$0xf] %v219_v28  ;;  %v223_v30 = vld [vmem:[%s2580_s6 + $0xc8] sm:$0xf] }
  0x3d   : >> { %222 = vst [vmem:[%s2576_s5 + $0x74] sm:$0xf] %v221_v29  ;;  %v225_v31 = vld [vmem:[%s2580_s6 + $0xcc] sm:$0xf]  ;;  %v227_v32 = vld [vmem:[%s2580_s6 + $0xd0] sm:$0xf] }
  0x3e   : >> { %224 = vst [vmem:[%s2576_s5 + $0x78] sm:$0xf] %v223_v30  ;;  %226 = vst [vmem:[%s2576_s5 + $0x7c] sm:$0xf] %v225_v31  ;;  %v229_v33 = vld [vmem:[%s2580_s6 + $0xdc] sm:$0xf] }
  0x3f   : >> { %228 = vst [vmem:[%s2576_s5 + $0x80] sm:$0xf] %v227_v32  ;;  %v231_v34 = vld [vmem:[%s2580_s6 + $0xe0] sm:$0xf]  ;;  %v233_v35 = vld [vmem:[%s2580_s6 + $0xe4] sm:$0xf] }
  0x40   : >> { %230 = vst [vmem:[%s2576_s5 + $0x84] sm:$0xf] %v229_v33  ;;  %232 = vst [vmem:[%s2576_s5 + $0x88] sm:$0xf] %v231_v34  ;;  %v235_v36 = vld [vmem:[%s2580_s6 + $0xf0] sm:$0xf] }
  0x41   : >> { %234 = vst [vmem:[%s2576_s5 + $0x8c] sm:$0xf] %v233_v35  ;;  %v237_v37 = vld [vmem:[%s2580_s6 + $0xf4] sm:$0xf]  ;;  %v239_v38 = vld [vmem:[%s2580_s6 + $0xf8] sm:$0xf] }
  0x42   : >> { %236 = vst [vmem:[%s2576_s5 + $0x90] sm:$0xf] %v235_v36  ;;  %238 = vst [vmem:[%s2576_s5 + $0x94] sm:$0xf] %v237_v37  ;;  %v241_v39 = vld [vmem:[%s2580_s6 + $0x104] sm:$0xf] }
  0x43   : >> { %240 = vst [vmem:[%s2576_s5 + $0x98] sm:$0xf] %v239_v38  ;;  %v243_v40 = vld [vmem:[%s2580_s6 + $0x108] sm:$0xf]  ;;  %v245_v41 = vld [vmem:[%s2580_s6 + $0x10c] sm:$0xf] }
  0x44   : >> { %242 = vst [vmem:[%s2576_s5 + $0x9c] sm:$0xf] %v241_v39  ;;  %244 = vst [vmem:[%s2576_s5 + $0xa0] sm:$0xf] %v243_v40  ;;  %v247_v42 = vld [vmem:[%s2580_s6 + $0x118] sm:$0xf] }
  0x45   : >> { %246 = vst [vmem:[%s2576_s5 + $0xa4] sm:$0xf] %v245_v41  ;;  %v249_v43 = vld [vmem:[%s2580_s6 + $0x11c] sm:$0xf]  ;;  %v251_v44 = vld [vmem:[%s2580_s6 + $0x120] sm:$0xf] }
  0x46   : >> { %248 = vst [vmem:[%s2576_s5 + $0xa8] sm:$0xf] %v247_v42  ;;  %250 = vst [vmem:[%s2576_s5 + $0xac] sm:$0xf] %v249_v43  ;;  %v253_v45 = vld [vmem:[%s2580_s6 + $0x12c] sm:$0xf] }
  0x47   : >> { %252 = vst [vmem:[%s2576_s5 + $0xb0] sm:$0xf] %v251_v44  ;;  %v255_v46 = vld [vmem:[%s2580_s6 + $0x130] sm:$0xf]  ;;  %v257_v47 = vld [vmem:[%s2580_s6 + $0x134] sm:$0xf] }
  0x48   : >> { %254 = vst [vmem:[%s2576_s5 + $0xb4] sm:$0xf] %v253_v45  ;;  %256 = vst [vmem:[%s2576_s5 + $0xb8] sm:$0xf] %v255_v46  ;;  %s3113_s9 = smov (%p260_p10, %s259_s9), 0  ;;  %s157_s8 = sadd.s32 1, %s2588_s8  }
  0x49   : >> { %258 = vst [vmem:[%s2576_s5 + $0xbc] sm:$0xf] %v257_v47  ;;  %s262_s10 = smul.u32 12, %s3113_s9  ;;  %p156_p11 = scmp.ge.s32.totalorder %s157_s8, %s2708_s4 }
  0x4a   : >> { %s3103_s7 = smov %s3113_s9 }
  0x4b   : >> { %s264_s6 = scalar_lea.vmem %s2700_s28, %s262_s10   ;;  %s265_s5 = scalar_lea.vmem %s2705_s30, %s262_s10 [#allocation2]  }
  0x4c   : > { %159 = sbr.rel (!%p156_p11) target bundleno = 41 (0x29), region = 218 }
  0x51 PF: > { %2448 = sdivrem.u32 %s3111_s24, 3 }
  0x52   : > { %s1999_s11 = smul.u32 12, %s2708_s4 }
  0x54   : > { %s2846_s17 = scalar_lea.vmem %s2700_s28, %s1999_s11   ;;  %s2849_s18 = scalar_lea.vmem %s2705_s30, %s1999_s11 [#allocation2]  }
  0x5a   : > { %s2851_s21 = spop.drf %2448 }
  0x5b   : > { %p2001_p12 = scmp.le.s32.totalorder %s2851_s21, 0 }
  0x5c   : > { %s3104_s22 = smov (!%p2001_p12), %s2849_s18  ;;  %s3105_s23 = smov (!%p2001_p12), %s2846_s17 }
  0x5d   : > { %1933 = sbr.rel (%p2001_p12) target bundleno = 116 (0x74), region = 223  ;;  %s2860_s25 = smov (!%p2001_p12), 0  }
  0x5e   : > { %s2862_s26 = smov (!%p2001_p12), 0  }
  0x62 LB: >> { %v282_v48 = vld [vmem:[%s2596_s23] sm:$0xf]  ;;  %v284_v49 = vld [vmem:[%s2596_s23 + $0x14] sm:$0xf]  ;;  %v286_v50 = vld [vmem:[%s2596_s23 + $0x28] sm:$0xf]  ;;  %s2604_s26 = sphi %s2862_s26, %s276_s26   ;;  %s2600_s25 = sphi %s2860_s25, %s3106_s25   ;;  %s2596_s23 = sphi %s3105_s23, %s319_s23   ;;  %s2592_s22 = sphi %s3104_s22, %s320_s22  }
  0x63   : >> { %283 = vst [vmem:[%s2592_s22] sm:$0xf] %v282_v48  ;;  %285 = vst [vmem:[%s2592_s22 + $0xc] sm:$0xf] %v284_v49  ;;  %v288_v51 = vld [vmem:[%s2596_s23 + $0x3c] sm:$0xf]  ;;  %s314_s24 = sadd.s32 1, %s2600_s25 }
  0x64   : >> { %287 = vst [vmem:[%s2592_s22 + $0x18] sm:$0xf] %v286_v50  ;;  %v290_v52 = vld [vmem:[%s2596_s23 + $0x50] sm:$0xf]  ;;  %v292_v53 = vld [vmem:[%s2596_s23 + $0x64] sm:$0xf]  ;;  %p315_p13 = scmp.ge.s32.totalorder %s314_s24, %s2851_s21 }
  0x65   : >> { %289 = vst [vmem:[%s2592_s22 + $0x24] sm:$0xf] %v288_v51  ;;  %291 = vst [vmem:[%s2592_s22 + $0x30] sm:$0xf] %v290_v52  ;;  %v294_v54 = vld [vmem:[%s2596_s23 + $0x78] sm:$0xf] }
  0x66   : >> { %293 = vst [vmem:[%s2592_s22 + $0x3c] sm:$0xf] %v292_v53  ;;  %v296_v55 = vld [vmem:[%s2596_s23 + $0x8c] sm:$0xf]  ;;  %v298_v56 = vld [vmem:[%s2596_s23 + $0xa0] sm:$0xf] }
  0x67   : >> { %295 = vst [vmem:[%s2592_s22 + $0x48] sm:$0xf] %v294_v54  ;;  %297 = vst [vmem:[%s2592_s22 + $0x54] sm:$0xf] %v296_v55  ;;  %v300_v57 = vld [vmem:[%s2596_s23 + $0xb4] sm:$0xf] }
  0x68   : >> { %299 = vst [vmem:[%s2592_s22 + $0x60] sm:$0xf] %v298_v56  ;;  %v302_v58 = vld [vmem:[%s2596_s23 + $0xc8] sm:$0xf]  ;;  %v304_v59 = vld [vmem:[%s2596_s23 + $0xdc] sm:$0xf] }
  0x69   : >> { %301 = vst [vmem:[%s2592_s22 + $0x6c] sm:$0xf] %v300_v57  ;;  %303 = vst [vmem:[%s2592_s22 + $0x78] sm:$0xf] %v302_v58  ;;  %v306_v60 = vld [vmem:[%s2596_s23 + $0xf0] sm:$0xf] }
  0x6a   : >> { %305 = vst [vmem:[%s2592_s22 + $0x84] sm:$0xf] %v304_v59  ;;  %v308_v61 = vld [vmem:[%s2596_s23 + $0x104] sm:$0xf]  ;;  %v310_v62 = vld [vmem:[%s2596_s23 + $0x118] sm:$0xf] }
  0x6b   : >> { %307 = vst [vmem:[%s2592_s22 + $0x90] sm:$0xf] %v306_v60  ;;  %309 = vst [vmem:[%s2592_s22 + $0x9c] sm:$0xf] %v308_v61  ;;  %v312_v63 = vld [vmem:[%s2596_s23 + $0x12c] sm:$0xf] }
  0x6c   : >> { %311 = vst [vmem:[%s2592_s22 + $0xa8] sm:$0xf] %v310_v62  ;;  %313 = vst [vmem:[%s2592_s22 + $0xb4] sm:$0xf] %v312_v63  ;;  %s3115_s24 = smov (%p315_p13, %s314_s24), 0  ;;  %s276_s26 = sadd.s32 1, %s2604_s26  }
  0x6d   : >> { %s2002_s27 = sshll.u32 %s3115_s24, 2  ;;  %p275_p0 = scmp.ge.s32.totalorder %s276_s26, %s2851_s21 }
  0x6e   : >> { %s319_s23 = scalar_lea.vmem %s2846_s17, %s2002_s27   ;;  %s320_s22 = scalar_lea.vmem %s2849_s18, %s2002_s27 [#allocation2]  }
  0x6f   : >> { %s3106_s25 = smov %s3115_s24  ;;  %278 = sbr.rel (!%p275_p0) target bundleno = 98 (0x62), region = 229 }
  0x74 PF: > { %p2004_p1 = scmp.ge.s32.totalorder %s2572_s14, 1  ;;  %p537_p2 = scmp.lt.s32.totalorder %s2572_s14, 3 }
  0x76   : > { %p538_p3 = pnand %p2004_p1, %p537_p2 }
  0x77   : > { %s544_s30 = sand.u32 (!%p538_p3), 1, %s2564_s12  }
  0x78   : > { %541 = sbr.rel (%p538_p3) target bundleno = 447 (0x1bf), region = 90 }
  0x79   : > { %s2290_s14 = smul.u32 (!%p538_p3), 192, %s544_s30 }
  0x7a   : > { %s2291_s5 = smul.u32 (!%p538_p3), 24, %s544_s30 }
  0x7b   : > { %s2946_s4 = scalar_lea.vmem (!%p538_p3), [#allocation2], %s2290_s14 }
  0x7c   : > { %s3055_s12 = scalar_lea.vmem (!%p538_p3), [#allocation3], %s2291_s5  }
  0x7d   : > { %v2927_v0 = vld [vmem:[%s3097_s1] sm:$0x3]  ;;  %vm596_vm0 = vcmask 1041408   ;;  %vm589_vm1 = vcmask 31744   ;;  %v2451_v3 = vld [vmem:[%s2946_s4 + $0xc] sm:$0xff]   ;;  %v2454_v6 = vld [vmem:[%s2946_s4 + $0x18] sm:$0xff]  }
  0x7e   : > { %2273 = vmatprep.subr.msk.bf16.mxu0 %vm596_vm0, %v2927_v0  ;;  %v2934_v1 = vsel %vm596_vm0, %v2927_v0, 0  ;;  %2274 = vmatprep.subr.msk.bf16.mxu1 %vm596_vm0, %v2927_v0  ;;  %v2450_v2 = vld [vmem:[%s2946_s4] sm:$0xff]   ;;  %v2452_v4 = vld [vmem:[%s2946_s4 + $0x8] ss:$0 sps:$4 sm:$0xff]   ;;  %v2453_v5 = vld [vmem:[%s2946_s4 + $0x14] ss:$0 sps:$4 sm:$0xff]  }
  0x7f   : > { %2178 = vmatpush3.bf16.msra.mxu0 %v2934_v1  ;;  %2184 = vmatpush3.bf16.msra.mxu1 %v2934_v1  ;;  %v2455_v7 = vld [vmem:[%s2946_s4 + $0x24] sm:$0xff]   ;;  %v2456_v8 = vld [vmem:[%s2946_s4 + $0x20] ss:$0 sps:$4 sm:$0xff]   ;;  %v2457_v9 = vld [vmem:[%s2946_s4 + $0x2c] ss:$0 sps:$4 sm:$0xff]   ;;  %s1706_s8 = smul.u32 (%p2689_p5), 3, %s2674_s15 }
  0x80   : > { %2275 = vmatprep.subr.msk.bf16.mxu0 %vm596_vm0, %v2927_v0  ;;  %2276 = vmatprep.subr.msk.bf16.mxu1 %vm596_vm0, %v2927_v0  ;;  %v2458_v10 = vld [vmem:[%s2946_s4 + $0x30] sm:$0xff]   ;;  %v2459_v11 = vld [vmem:[%s2946_s4 + $0x3c] sm:$0xff]   ;;  %v2460_v12 = vld [vmem:[%s2946_s4 + $0x38] ss:$0 sps:$4 sm:$0xff]   ;;  %s2128_s9 = smul.u32 (%p2689_p5), 24, %s2674_s15 }
  0x81   : > { %2179 = vmatprep.mubr.msk.bf16.mxu0 %vm589_vm1, %v2450_v2  ;;  %2185 = vmatprep.mubr.msk.bf16.mxu1 %vm589_vm1, %v2451_v3  ;;  %v2461_v13 = vld [vmem:[%s2946_s4 + $0x44] ss:$0 sps:$4 sm:$0xff]   ;;  %v2462_v14 = vld [vmem:[%s2946_s4 + $0x48] sm:$0xff]   ;;  %v2463_v15 = vld [vmem:[%s2946_s4 + $0x54] sm:$0xff]   ;;  %s1707_s10 = ssub.s32 (%p2689_p5), 5, %s1706_s8 }
  0x82   : > { %2180 = vmatmul.mubr.msk.bf16.vlgmr.msra.gmra.mxu0 %vm589_vm1, %v2452_v4  ;;  %2186 = vmatmul.mubr.msk.bf16.vlgmr.msra.gmra.mxu1 %vm589_vm1, %v2453_v5  ;;  %v2464_v16 = vld [vmem:[%s2946_s4 + $0x50] ss:$0 sps:$4 sm:$0xff]   ;;  %v2465_v17 = vld [vmem:[%s2946_s4 + $0x5c] ss:$0 sps:$4 sm:$0xff]   ;;  %v2466_v18 = vld [vmem:[%s2946_s4 + $0x60] sm:$0xff]   ;;  %p1708_p4 = scmp.lt.s32.totalorder (%p2689_p5), %s1707_s10, 3  ;;  %s3067_s18 = scalar_lea.vmem (%p2689_p5), %s3099_s3, %s2128_s9  }
  0x83   : > { %2190 = vmatpush3.bf16.msra.mxu0 %v2934_v1  ;;  %2196 = vmatpush3.bf16.msra.mxu1 %v2934_v1  ;;  %v2467_v19 = vld [vmem:[%s2946_s4 + $0x6c] sm:$0xff]   ;;  %v2468_v20 = vld [vmem:[%s2946_s4 + $0x68] ss:$0 sps:$4 sm:$0xff]   ;;  %v2469_v21 = vld [vmem:[%s2946_s4 + $0x74] ss:$0 sps:$4 sm:$0xff]  }
  0x84   : > { %2191 = vmatprep.mubr.msk.bf16.mxu0 %vm589_vm1, %v2454_v6  ;;  %2197 = vmatprep.mubr.msk.bf16.mxu1 %vm589_vm1, %v2455_v7  ;;  %v2470_v22 = vld [vmem:[%s2946_s4 + $0x78] sm:$0xff]   ;;  %v2471_v23 = vld [vmem:[%s2946_s4 + $0x84] sm:$0xff]   ;;  %v2472_v24 = vld [vmem:[%s2946_s4 + $0x80] ss:$0 sps:$4 sm:$0xff]  }
  0x85   : > { %2277 = vmatprep.subr.msk.bf16.mxu0 %vm596_vm0, %v2927_v0  ;;  %2278 = vmatprep.subr.msk.bf16.mxu1 %vm596_vm0, %v2927_v0  ;;  %v2473_v25 = vld [vmem:[%s2946_s4 + $0x8c] ss:$0 sps:$4 sm:$0xff]   ;;  %v2474_v26 = vld [vmem:[%s2946_s4 + $0x90] sm:$0xff]   ;;  %v2475_v27 = vld [vmem:[%s2946_s4 + $0x9c] sm:$0xff]  }
  0x86   : > { %v2476_v28 = vld [vmem:[%s2946_s4 + $0x98] ss:$0 sps:$4 sm:$0xff]   ;;  %v2477_v29 = vld [vmem:[%s2946_s4 + $0xa4] ss:$0 sps:$4 sm:$0xff]   ;;  %v2478_v30 = vld [vmem:[%s2946_s4 + $0xa8] sm:$0xff]  }
  0x87   : > { %v2479_v31 = vld [vmem:[%s2946_s4 + $0xb4] sm:$0xff]   ;;  %v2480_v32 = vld [vmem:[%s2946_s4 + $0xb0] ss:$0 sps:$4 sm:$0xff]   ;;  %v2481_v33 = vld [vmem:[%s2946_s4 + $0xbc] ss:$0 sps:$4 sm:$0xff]  }
  0x8a   : > { %2192 = vmatmul.mubr.msk.bf16.vlgmr.msra.gmra.mxu0 %vm589_vm1, %v2456_v8  ;;  %2198 = vmatmul.mubr.msk.bf16.vlgmr.msra.gmra.mxu1 %vm589_vm1, %v2457_v9 }
  0x8b   : > { %2202 = vmatpush3.bf16.msra.mxu0 %v2934_v1  ;;  %2208 = vmatpush3.bf16.msra.mxu1 %v2934_v1 }
  0x8c   : > { %2203 = vmatprep.mubr.msk.bf16.mxu0 %vm589_vm1, %v2458_v10  ;;  %2209 = vmatprep.mubr.msk.bf16.mxu1 %vm589_vm1, %v2459_v11 }
  0x8d   : > { %2279 = vmatprep.subr.msk.bf16.mxu0 %vm596_vm0, %v2927_v0  ;;  %2280 = vmatprep.subr.msk.bf16.mxu1 %vm596_vm0, %v2927_v0 }
  0x92   : > { %2204 = vmatmul.mubr.msk.bf16.vlgmr.msra.gmra.mxu0 %vm589_vm1, %v2460_v12  ;;  %2210 = vmatmul.mubr.msk.bf16.vlgmr.msra.gmra.mxu1 %vm589_vm1, %v2461_v13 }
  0x93   : > { %2214 = vmatpush3.bf16.msra.mxu0 %v2934_v1  ;;  %2220 = vmatpush3.bf16.msra.mxu1 %v2934_v1 }
  0x94   : > { %2215 = vmatprep.mubr.msk.bf16.mxu0 %vm589_vm1, %v2462_v14  ;;  %2221 = vmatprep.mubr.msk.bf16.mxu1 %vm589_vm1, %v2463_v15 }
  0x95   : > { %2281 = vmatprep.subr.msk.bf16.mxu0 %vm596_vm0, %v2927_v0  ;;  %2282 = vmatprep.subr.msk.bf16.mxu1 %vm596_vm0, %v2927_v0 }
  0x9a   : > { %2216 = vmatmul.mubr.msk.bf16.vlgmr.msra.gmra.mxu0 %vm589_vm1, %v2464_v16  ;;  %2222 = vmatmul.mubr.msk.bf16.vlgmr.msra.gmra.mxu1 %vm589_vm1, %v2465_v17 }
  0x9b   : > { %2226 = vmatpush3.bf16.msra.mxu0 %v2934_v1  ;;  %2232 = vmatpush3.bf16.msra.mxu1 %v2934_v1 }
  0x9c   : > { %2227 = vmatprep.mubr.msk.bf16.mxu0 %vm589_vm1, %v2466_v18  ;;  %2233 = vmatprep.mubr.msk.bf16.mxu1 %vm589_vm1, %v2467_v19 }
  0x9d   : > { %2283 = vmatprep.subr.msk.bf16.mxu0 %vm596_vm0, %v2927_v0  ;;  %2284 = vmatprep.subr.msk.bf16.mxu1 %vm596_vm0, %v2927_v0 }
  0xa2   : > { %2228 = vmatmul.mubr.msk.bf16.vlgmr.msra.gmra.mxu0 %vm589_vm1, %v2468_v20  ;;  %2234 = vmatmul.mubr.msk.bf16.vlgmr.msra.gmra.mxu1 %vm589_vm1, %v2469_v21 }
  0xa3   : > { %2238 = vmatpush3.bf16.msra.mxu0 %v2934_v1  ;;  %2244 = vmatpush3.bf16.msra.mxu1 %v2934_v1 }
  0xa4   : > { %2239 = vmatprep.mubr.msk.bf16.mxu0 %vm589_vm1, %v2470_v22  ;;  %2245 = vmatprep.mubr.msk.bf16.mxu1 %vm589_vm1, %v2471_v23 }
  0xa5   : > { %2285 = vmatprep.subr.msk.bf16.mxu0 %vm596_vm0, %v2927_v0  ;;  %2286 = vmatprep.subr.msk.bf16.mxu1 %vm596_vm0, %v2927_v0 }
  0xaa   : > { %2240 = vmatmul.mubr.msk.bf16.vlgmr.msra.gmra.mxu0 %vm589_vm1, %v2472_v24  ;;  %2246 = vmatmul.mubr.msk.bf16.vlgmr.msra.gmra.mxu1 %vm589_vm1, %v2473_v25 }
  0xab   : > { %2250 = vmatpush3.bf16.msra.mxu0 %v2934_v1  ;;  %2256 = vmatpush3.bf16.msra.mxu1 %v2934_v1 }
  0xac   : > { %2251 = vmatprep.mubr.msk.bf16.mxu0 %vm589_vm1, %v2474_v26  ;;  %2257 = vmatprep.mubr.msk.bf16.mxu1 %vm589_vm1, %v2475_v27 }
  0xad   : > { %2287 = vmatprep.subr.msk.bf16.mxu0 %vm596_vm0, %v2927_v0  ;;  %2288 = vmatprep.subr.msk.bf16.mxu1 %vm596_vm0, %v2927_v0 }
  0xb2   : > { %2252 = vmatmul.mubr.msk.bf16.vlgmr.msra.gmra.mxu0 %vm589_vm1, %v2476_v28  ;;  %2258 = vmatmul.mubr.msk.bf16.vlgmr.msra.gmra.mxu1 %vm589_vm1, %v2477_v29 }
  0xb3   : > { %2262 = vmatpush3.bf16.msra.mxu0 %v2934_v1  ;;  %2268 = vmatpush3.bf16.msra.mxu1 %v2934_v1 }
  0xb4   : > { %2263 = vmatprep.mubr.msk.bf16.mxu0 %vm589_vm1, %v2478_v30  ;;  %2269 = vmatprep.mubr.msk.bf16.mxu1 %vm589_vm1, %v2479_v31 }
  0xba   : > { %2264 = vmatmul.mubr.msk.bf16.vlgmr.msra.gmra.mxu0 %vm589_vm1, %v2480_v32  ;;  %2270 = vmatmul.mubr.msk.bf16.vlgmr.msra.gmra.mxu1 %vm589_vm1, %v2481_v33 }
 0x142   : > { %v2181_v34 = vpop.f32.mrf.mxu0  ;;  %v2187_v35 = vpop.f32.mrf.mxu1 }
 0x143   : > { %v716_v53 = vmax.f32 %v2181_v34, %v2187_v35 }
 0x144   : > { %v634_v36 = vpop.f32.mrf.mxu0  ;;  %v700_v37 = vpop.f32.mrf.mxu1 }
 0x145   : > { %v714_v56 = vmax.f32 %v634_v36, %v700_v37 }
 0x146   : > { %v2182_v38 = vpop.f32.mrf.mxu0  ;;  %v2188_v39 = vpop.f32.mrf.mxu1 }
 0x148   : > { %v637_v40 = vpop.f32.mrf.mxu0  ;;  %v703_v41 = vpop.f32.mrf.mxu1 }
 0x149   : > { %v715_v63 = vmax.f32 %v637_v40, %v703_v41 }
 0x14a   : > { %v2193_v42 = vpop.f32.mrf.mxu0  ;;  %v2199_v43 = vpop.f32.mrf.mxu1 }
 0x14b   : > { %v785_v57 = vmax.f32 %v716_v53, %v2193_v42 }
 0x14c   : > { %v769_v44 = vpop.f32.mrf.mxu0  ;;  %v838_v45 = vpop.f32.mrf.mxu1 }
 0x14d   : > { %v783_v60 = vmax.f32 %v714_v56, %v769_v44  ;;  %v854_v0 = vmax.f32 %v785_v57, %v2199_v43 }
 0x14e   : > { %v2194_v46 = vpop.f32.mrf.mxu0  ;;  %v2200_v47 = vpop.f32.mrf.mxu1 }
 0x14f   : > { %v852_v3 = vmax.f32 %v783_v60, %v838_v45 }
 0x150   : > { %v772_v48 = vpop.f32.mrf.mxu0  ;;  %v841_v49 = vpop.f32.mrf.mxu1 }
 0x151   : > { %v784_v4 = vmax.f32 %v715_v63, %v772_v48 }
 0x152   : > { %v2205_v50 = vpop.f32.mrf.mxu0  ;;  %v2211_v51 = vpop.f32.mrf.mxu1 }
 0x153   : > { %v923_v5 = vmax.f32 %v854_v0, %v2205_v50  ;;  %v853_v11 = vmax.f32 %v784_v4, %v841_v49 }
 0x154   : > { %v907_v52 = vpop.f32.mrf.mxu0  ;;  %v976_v54 = vpop.f32.mrf.mxu1 }
 0x155   : > { %v921_v8 = vmax.f32 %v852_v3, %v907_v52  ;;  %v992_v12 = vmax.f32 %v923_v5, %v2211_v51  ;;  %v2114_v3 = vld [vmem:[%s3098_s2] ss:$0 sm:$0xff] }
 0x156   : > { %v2206_v55 = vpop.f32.mrf.mxu0  ;;  %v2212_v58 = vpop.f32.mrf.mxu1 }
 0x157   : > { %v990_v15 = vmax.f32 %v921_v8, %v976_v54 }
 0x158   : > { %v910_v59 = vpop.f32.mrf.mxu0  ;;  %v979_v61 = vpop.f32.mrf.mxu1 }
 0x159   : > { %v922_v16 = vmax.f32 %v853_v11, %v910_v59 }
 0x15a   : > { %v2217_v62 = vpop.f32.mrf.mxu0  ;;  %v2223_v1 = vpop.f32.mrf.mxu1 }
 0x15b   : > { %v1061_v17 = vmax.f32 %v992_v12, %v2217_v62  ;;  %v991_v23 = vmax.f32 %v922_v16, %v979_v61 }
 0x15c   : > { %v1045_v2 = vpop.f32.mrf.mxu0  ;;  %v1114_v6 = vpop.f32.mrf.mxu1 }
 0x15d   : > { %v1059_v20 = vmax.f32 %v990_v15, %v1045_v2  ;;  %v1130_v24 = vmax.f32 %v1061_v17, %v2223_v1 }
 0x15e   : > { %v2218_v7 = vpop.f32.mrf.mxu0  ;;  %v2224_v9 = vpop.f32.mrf.mxu1 }
 0x15f   : > { %v1128_v27 = vmax.f32 %v1059_v20, %v1114_v6 }
 0x160   : > { %v1048_v10 = vpop.f32.mrf.mxu0  ;;  %v1117_v13 = vpop.f32.mrf.mxu1 }
 0x161   : > { %v1060_v28 = vmax.f32 %v991_v23, %v1048_v10 }
 0x162   : > { %v2229_v14 = vpop.f32.mrf.mxu0  ;;  %v2235_v18 = vpop.f32.mrf.mxu1 }
 0x163   : > { %v1199_v29 = vmax.f32 %v1130_v24, %v2229_v14  ;;  %v1129_v35 = vmax.f32 %v1060_v28, %v1117_v13 }
 0x164   : > { %v1183_v19 = vpop.f32.mrf.mxu0  ;;  %v1252_v21 = vpop.f32.mrf.mxu1 }
 0x165   : > { %v1197_v32 = vmax.f32 %v1128_v27, %v1183_v19  ;;  %v1268_v36 = vmax.f32 %v1199_v29, %v2235_v18 }
 0x166   : > { %v2230_v22 = vpop.f32.mrf.mxu0  ;;  %v2236_v25 = vpop.f32.mrf.mxu1 }
 0x167   : > { %v1266_v39 = vmax.f32 %v1197_v32, %v1252_v21 }
 0x168   : > { %v1186_v26 = vpop.f32.mrf.mxu0  ;;  %v1255_v30 = vpop.f32.mrf.mxu1 }
 0x169   : > { %v1198_v40 = vmax.f32 %v1129_v35, %v1186_v26 }
 0x16a   : > { %v2241_v31 = vpop.f32.mrf.mxu0  ;;  %v2247_v33 = vpop.f32.mrf.mxu1 }
 0x16b   : > { %v1337_v41 = vmax.f32 %v1268_v36, %v2241_v31  ;;  %v1267_v47 = vmax.f32 %v1198_v40, %v1255_v30 }
 0x16c   : > { %v1321_v34 = vpop.f32.mrf.mxu0  ;;  %v1390_v37 = vpop.f32.mrf.mxu1 }
 0x16d   : > { %v1335_v44 = vmax.f32 %v1266_v39, %v1321_v34  ;;  %v1406_v48 = vmax.f32 %v1337_v41, %v2247_v33 }
 0x16e   : > { %v2242_v38 = vpop.f32.mrf.mxu0  ;;  %v2248_v42 = vpop.f32.mrf.mxu1 }
 0x16f   : > { %v1404_v51 = vmax.f32 %v1335_v44, %v1390_v37 }
 0x170   : > { %v1324_v43 = vpop.f32.mrf.mxu0  ;;  %v1393_v45 = vpop.f32.mrf.mxu1 }
 0x171   : > { %v1336_v52 = vmax.f32 %v1267_v47, %v1324_v43 }
 0x172   : > { %v2253_v46 = vpop.f32.mrf.mxu0  ;;  %v2259_v49 = vpop.f32.mrf.mxu1 }
 0x173   : > { %v1475_v53 = vmax.f32 %v1406_v48, %v2253_v46  ;;  %v1405_v59 = vmax.f32 %v1336_v52, %v1393_v45 }
 0x174   : > { %v1459_v50 = vpop.f32.mrf.mxu0  ;;  %v1528_v54 = vpop.f32.mrf.mxu1 }
 0x175   : > { %v1473_v56 = vmax.f32 %v1404_v51, %v1459_v50  ;;  %v1544_v60 = vmax.f32 %v1475_v53, %v2259_v49 }
 0x176   : > { %v2254_v55 = vpop.f32.mrf.mxu0  ;;  %v2260_v57 = vpop.f32.mrf.mxu1 }
 0x177   : > { %v1542_v63 = vmax.f32 %v1473_v56, %v1528_v54 }
 0x178   : > { %v1462_v58 = vpop.f32.mrf.mxu0  ;;  %v1531_v61 = vpop.f32.mrf.mxu1 }
 0x179   : > { %v1474_v0 = vmax.f32 %v1405_v59, %v1462_v58 }
 0x17a   : > { %v2265_v62 = vpop.f32.mrf.mxu0  ;;  %v2271_v2 = vpop.f32.mrf.mxu1 }
 0x17b   : > { %v1613_v1 = vmax.f32 %v1544_v60, %v2265_v62  ;;  %v1543_v9 = vmax.f32 %v1474_v0, %v1531_v61 }
 0x17c   : > { %v1597_v4 = vpop.f32.mrf.mxu0  ;;  %v1666_v7 = vpop.f32.mrf.mxu1 }
 0x17d   : > { %v1682_v5 = vmax.f32 %v1613_v1, %v2271_v2  ;;  %v1611_v6 = vmax.f32 %v1542_v63, %v1597_v4 }
 0x17e   : > { %v2266_v8 = vpop.f32.mrf.mxu0  ;;  %v2272_v12 = vpop.f32.mrf.mxu1 }
 0x17f   : > { %v1692_v10 = vadd.f32 %v2114_v3, %v1682_v5  ;;  %v1680_v11 = vmax.f32 %v1611_v6, %v1666_v7 }
 0x180   : > { %v1600_v13 = vpop.f32.mrf.mxu0  ;;  %v1669_v17 = vpop.f32.mrf.mxu1 }
 0x181   : > { %v1695_v14 = vmax.f32 %v1692_v10, 0.0  ;;  %v1690_v15 = vadd.f32 %v2114_v3, %v1680_v11  ;;  %v1612_v16 = vmax.f32 %v1543_v9, %v1600_v13 }
 0x183   : > { %1698 = vst [vmem:[%s3055_s12 + $0x10] sm:$0xff] %v1695_v14  ;;  %v1693_v18 = vmax.f32 %v1690_v15, 0.0  ;;  %v1681_v19 = vmax.f32 %v1612_v16, %v1669_v17 }
 0x185   : > { %1696 = vst [vmem:[%s3055_s12] sm:$0xff] %v1693_v18  ;;  %v1691_v20 = vadd.f32 %v2114_v3, %v1681_v19  ;;  %1705 = sbr.rel (!%p2689_p5) target bundleno = 447 (0x1bf), region = 98 }
 0x187   : > { %v1694_v21 = vmax.f32 %v1691_v20, 0.0 }
 0x189   : > { %1697 = vst [vmem:[%s3055_s12 + $0x8] sm:$0xff] %v1694_v21 }
 0x18a   : > { %s3117_s10 = smov (!%p1708_p4, %s1707_s10), 3 }
 0x18b   : > { %s2115_s21 = sshll.u32 %s3117_s10, 7 }
 0x18c   : > { %p2118_p6 = scmp.eq.s32.totalorder %s2115_s21, 0 }
 0x18d   : > { %2482 = sdivrem.u32 (!%p2118_p6), %s3117_s10, 3 }
 0x18e   : > { %1716 = sbr.rel (%p2118_p6) target bundleno = 447 (0x1bf), region = 102 }
 0x196   : > { %s3073_s20 = spop.drf %2482 }
 0x197   : > { %p2119_p5 = scmp.le.s32.totalorder %s3073_s20, 0 }
 0x198   : > { %s2606_s15 = smov (!%p2119_p5), %s3067_s18   ;;  %s2610_s22 = smov (!%p2119_p5), %s3055_s12  }
 0x199   : > { %1947 = sbr.rel (%p2119_p5) target bundleno = 422 (0x1a6), region = 234  ;;  %s2614_s23 = smov (!%p2119_p5), 0  }
 0x19a   : > { %s2618_s25 = smov (!%p2119_p5), 0  }
 0x19e LB: >> { %v1785_v22 = vld [vmem:[%s2612_s22] sm:$0xff]  ;;  %v1787_v23 = vld [vmem:[%s2612_s22 + $0x8] sm:$0xff]  ;;  %v1789_v24 = vld [vmem:[%s2612_s22 + $0x10] sm:$0xff]  ;;  %s1791_s26 = sadd.s32 1, %s2616_s23  ;;  %s1779_s25 = sadd.s32 1, %s2620_s25   ;;  %s2620_s25 = sphi %s2618_s25, %s1779_s25   ;;  %s2616_s23 = sphi %s2614_s23, %s2615_s23   ;;  %s2612_s22 = sphi %s2610_s22, %s1796_s22   ;;  %s2608_s15 = sphi %s2606_s15, %s1797_s15  }
 0x19f   : >> { %1786 = vst [vmem:[%s2608_s15] sm:$0xff] %v1785_v22  ;;  %1788 = vst [vmem:[%s2608_s15 + $0x8] sm:$0xff] %v1787_v23  ;;  %p1792_p7 = scmp.ge.s32.totalorder %s1791_s26, %s3073_s20  ;;  %p1778_p8 = scmp.ge.s32.totalorder %s1779_s25, %s3073_s20 }
 0x1a0   : >> { %1790 = vst [vmem:[%s2608_s15 + $0x10] sm:$0xff] %v1789_v24 }
 0x1a1   : >> { %s3119_s26 = smov (%p1792_p7, %s1791_s26), 0  ;;  %1781 = sbr.rel (!%p1778_p8) target bundleno = 414 (0x19e), region = 240 }
 0x1a2   : >> { %s1794_s24 = smul.u32 24, %s3119_s26  ;;  %s2615_s23 = smov %s3119_s26  }
 0x1a4   : >> { %s1796_s22 = scalar_lea.vmem %s3055_s12, %s1794_s24 [#allocation3]   ;;  %s1797_s15 = scalar_lea.vmem %s3067_s18, %s1794_s24  }
 0x1a6 PF: > { %2484 = sdivrem.u32 %s3117_s10, 3 }
 0x1a7   : > { %s2120_s27 = smul.u32 24, %s3073_s20 }
 0x1a9   : > { %s1802_s28 = scalar_lea.vmem %s3055_s12, %s2120_s27 [#allocation3]   ;;  %s1804_s29 = scalar_lea.vmem %s3067_s18, %s2120_s27  }
 0x1af   : > { %s2485_s30 = spop.drf %2484 }
 0x1b0   : > { %p2122_p9 = scmp.le.s32.totalorder %s2485_s30, 0 }
 0x1b1   : > { %s2622_s14 = smov (!%p2122_p9), %s1804_s29   ;;  %s2626_s4 = smov (!%p2122_p9), %s1802_s28  }
 0x1b2   : > { %1961 = sbr.rel (%p2122_p9) target bundleno = 447 (0x1bf), region = 245  ;;  %s2630_s5 = smov (!%p2122_p9), 0  }
 0x1b3   : > { %s2634_s6 = smov (!%p2122_p9), 0  }
 0x1b7 LB: >> { %v1814_v25 = vld [vmem:[%s2628_s4] sm:$0xff]  ;;  %s1816_s7 = sadd.s32 1, %s2632_s5  ;;  %s1808_s6 = sadd.s32 1, %s2636_s6   ;;  %s2636_s6 = sphi %s2634_s6, %s1808_s6   ;;  %s2632_s5 = sphi %s2630_s5, %s2631_s5   ;;  %s2628_s4 = sphi %s2626_s4, %s1821_s4   ;;  %s2624_s14 = sphi %s2622_s14, %s1822_s14  }
 0x1b8   : >> { %1815 = vst [vmem:[%s2624_s14] sm:$0xff] %v1814_v25  ;;  %p1817_p10 = scmp.ge.s32.totalorder %s1816_s7, %s2485_s30  ;;  %p1807_p11 = scmp.ge.s32.totalorder %s1808_s6, %s2485_s30 }
 0x1ba   : >> { %s3121_s7 = smov (%p1817_p10, %s1816_s7), 0  ;;  %1810 = sbr.rel (!%p1807_p11) target bundleno = 439 (0x1b7), region = 251 }
 0x1bb   : >> { %s2123_s12 = sshll.u32 %s3121_s7, 3  ;;  %s2631_s5 = smov %s3121_s7  }
 0x1bc   : >> { %s1821_s4 = scalar_lea.vmem %s1802_s28, %s2123_s12 [#allocation3]   ;;  %s1822_s14 = scalar_lea.vmem %s1804_s29, %s2123_s12  }
 0x1bf PF: > { %p10_p12 = scmp.ge.s32.totalorder %s2677_s16, 4   ;;  %s3107_s12 = smov %s2568_s13 }
 0x1c0   : > { %s3108_s13 = smov %s2687_s19  ;;  %s3109_s14 = smov %s2677_s16 }
 0x1c1   :  { %12 = sbr.rel (!%p10_p12) target bundleno = 2 (0x2), region = 262 }

</bundles_post_ra>
